<compile_context>
chip_gen: v6e
topology: v6e:2x2x1
jax: 0.10.0
libtpu: 0.0.40
codegen_flags: <defaults>
</compile_context>

<pallas_src>
import functools
import inspect

import jax
import jax.numpy as jnp
from jax.experimental import pallas as pl
from jax.experimental.pallas import tpu as pltpu


_MIB = 1024 * 1024

# pipeline_mode=pl.Buffered(n) is only used if this JAX version supports it.
_HAS_BUFFERED = (
    hasattr(pl, "Buffered")
    and "pipeline_mode" in inspect.signature(pl.BlockSpec).parameters
)


def _round_up(x, m):
    return (x + m - 1) // m * m


def _largest_k_tile(k_padded, max_tile, unit=128):
    """Largest multiple of `unit` that divides `k_padded` and is <= max_tile."""
    n = k_padded // unit
    best = 1
    for d in range(1, n + 1):
        if n % d == 0 and d * unit <= max_tile:
            best = d
    return best * unit


def _vmem_capacity_bytes():
    """Per-core VMEM capacity; conservative fallback (v7x = 64 MiB/TC)."""
    try:
        info = pltpu.get_tpu_info()
        cap = getattr(info, "vmem_capacity_bytes", None)
        if cap:
            return int(cap)
    except Exception:
        pass
    return 64 * _MIB


def _spec(shape, index_map, buffers=None):
    """BlockSpec with an optional buffer-count override (guarded by API check)."""
    if buffers is not None and _HAS_BUFFERED:
        return pl.BlockSpec(shape, index_map, pipeline_mode=pl.Buffered(buffers))
    return pl.BlockSpec(shape, index_map)


def _reglog_mid_kernel(x_ref, w1_ref, b1_ref, w2_ref, b2_ref, o_ref, acc_ref):
    """Fused (x @ W1^T + b1) @ W2^T + b2; grid = (M tiles, K tiles)."""
    k = pl.program_id(1)

    @pl.when(k == 0)
    def _():
        acc_ref[...] = jnp.zeros_like(acc_ref)

    # First linear: accumulate partial products over the K tiles (f32 acc).
    # Cast the streamed x tile to the weight compute dtype in-kernel (free
    # under the MXU) instead of materializing a cast copy of x in HBM.
    acc_ref[...] += jnp.dot(
        x_ref[...].astype(w1_ref.dtype),
        w1_ref[...],
        preferred_element_type=jnp.float32,
    )

    @pl.when(k == pl.num_programs(1) - 1)
    def _():
        mid = acc_ref[...] + b1_ref[...]            # f32 epilogue
        out = (
            jnp.dot(
                mid.astype(w2_ref.dtype),
                w2_ref[...],
                preferred_element_type=jnp.float32,
            )
            + b2_ref[...]
        )
        o_ref[...] = out.astype(o_ref.dtype)


def prepare_params(w1, b1, w2, b2, compute_dtype=jnp.float32):
    """One-time weight layout prep (do NOT run per forward call).

    * Transposes to (K, mid) / (mid, num_labels) so the kernel streams
      row-major tiles straight into the MXU.
    * Pads K / mid / num_labels up to multiples of 128 so every block is
      lane/sublane aligned and output stores are unmasked lane-dense `vst`s.
    * Optionally casts weights to a narrower compute dtype (bf16 halves the
      dominant W1 HBM traffic); biases stay f32 for the epilogue.
    """
    mid_units, K = w1.shape
    num_labels = w2.shape[0]
    K_p = _round_up(K, 128)
    mid_p = _round_up(mid_units, 128)
    lab_p = _round_up(num_labels, 128)

    w1t = jnp.zeros((K_p, mid_p), compute_dtype)
    w1t = w1t.at[:K, :mid_units].set(w1.T.astype(compute_dtype))
    b1p = jnp.zeros((1, mid_p), jnp.float32)
    b1p = b1p.at[0, :mid_units].set(b1.astype(jnp.float32))
    w2t = jnp.zeros((mid_p, lab_p), compute_dtype)
    w2t = w2t.at[:mid_units, :num_labels].set(w2.T.astype(compute_dtype))
    b2p = jnp.zeros((1, lab_p), jnp.float32)
    b2p = b2p.at[0, :num_labels].set(b2.astype(jnp.float32))
    return w1t, b1p, w2t, b2p


@functools.partial(jax.jit, static_argnames=("num_labels",))
def reglog_mid_forward(x, w1t, b1p, w2t, b2p, *, num_labels):
    """x: (B, C, H, W); w1t/b1p/w2t/b2p: outputs of prepare_params."""
    B = x.shape[0]
    K = x.shape[1] * x.shape[2] * x.shape[3]
    K_p, mid_p = w1t.shape
    lab_p = w2t.shape[1]

    w_itemsize = jnp.dtype(w1t.dtype).itemsize
    x_itemsize = jnp.dtype(x.dtype).itemsize
    out_itemsize = x_itemsize

    # ---- batch (M) tiling --------------------------------------------------
    # Sub-32-bit compute packs 2 rows/sublane -> keep row tiles 16-aligned.
    row_unit = 8 if w_itemsize >= 4 else 16
    if B >= 256:
        # Adaptive tm: pick the candidate that wastes the least zero-padding
        # (prefer the biggest tile on ties) so e.g. B=257 doesn't pad to 512.
        tm, best_pad = 256, _round_up(B, 256) - B
        for cand in (128, 64):
            pad = _round_up(B, cand) - B
            if pad < best_pad:
                tm, best_pad = cand, pad
    else:
        tm = _round_up(B, row_unit)
    B_p = _round_up(B, tm)

    # ---- generation-aware VMEM budgeting ------------------------------------
    capacity = _vmem_capacity_bytes()
    # ~48 MiB on v5e/v6e (128 MiB VMEM), ~48 MiB on v7x (3/4 of 64 MiB).
    total_budget = min(48 * _MIB, (capacity * 3) // 4)

    resident_bufs = 1 if _HAS_BUFFERED else 2       # constant-block buffering
    resident = (
        resident_bufs * mid_p * lab_p * w_itemsize  # W2^T (constant block)
        + resident_bufs * 8 * (mid_p + lab_p) * 4   # b1/b2 (sublane-padded)
        + tm * mid_p * 4                            # f32 accumulator scratch
        + 2 * tm * lab_p * out_itemsize             # double-buffered output
    )
    streamed_budget = max(total_budget - resident, 2 * _MIB)

    # ---- K tiling: largest lane-aligned tile fitting the streamed budget ----
    stream_bufs = 2
    per_k_col = stream_bufs * (tm * x_itemsize + mid_p * w_itemsize)
    tk_max = max(128, streamed_budget // per_k_col)
    tk = _largest_k_tile(K_p, tk_max)
    # Tiny streamed tiles expose per-step DMA latency; deepen the pipeline.
    stream_depth = 3 if (tk <= 256 and K_p // tk >= 4) else None

    grid = (B_p // tm, K_p // tk)

    # ---- input plumbing: skip the pad round-trip when nothing to pad --------
    x_flat = x.reshape(B, K)
    if B_p != B or K_p != K:
        x_flat = jnp.pad(x_flat, ((0, B_p - B), (0, K_p - K)))

    vmem_limit = int(min(capacity, 112 * _MIB))

    out = pl.pallas_call(
        _reglog_mid_kernel,
        out_shape=jax.ShapeDtypeStruct((B_p, lab_p), x.dtype),
        grid_spec=pltpu.PrefetchScalarGridSpec(
            num_scalar_prefetch=0,
            grid=grid,
            in_specs=[
                _spec((tm, tk), lambda m, k: (m, k), buffers=stream_depth),     # x
                _spec((tk, mid_p), lambda m, k: (k, 0), buffers=stream_depth),  # W1^T
                _spec((1, mid_p), lambda m, k: (0, 0), buffers=1),              # b1
                _spec((mid_p, lab_p), lambda m, k: (0, 0), buffers=1),          # W2^T
                _spec((1, lab_p), lambda m, k: (0, 0), buffers=1),              # b2
            ],
            out_specs=pl.BlockSpec((tm, lab_p), lambda m, k: (m, 0)),
            scratch_shapes=[pltpu.VMEM((tm, mid_p), jnp.float32)],
        ),
        compiler_params=pltpu.CompilerParams(
            dimension_semantics=("parallel", "arbitrary"),
            vmem_limit_bytes=vmem_limit,
        ),
    )(x_flat, w1t, b1p, w2t, b2p)

    return out[:B, :num_labels]


def init_params(key, in_features, mid_units, num_labels, dtype=jnp.float32):
    """Deterministic init mimicking nn.Linear's uniform(-1/sqrt(fan_in), ...)."""
    k1, k2, k3, k4 = jax.random.split(key, 4)
    bound1 = 1.0 / float(in_features) ** 0.5
    bound2 = 1.0 / float(mid_units) ** 0.5
    w1 = jax.random.uniform(k1, (mid_units, in_features), dtype, -bound1, bound1)
    b1 = jax.random.uniform(k2, (mid_units,), dtype, -bound1, bound1)
    w2 = jax.random.uniform(k3, (num_labels, mid_units), dtype, -bound2, bound2)
    b2 = jax.random.uniform(k4, (num_labels,), dtype, -bound2, bound2)
    return w1, b1, w2, b2


if __name__ == "__main__":
    # Small shapes consistent with the module: x is (B, C, H, W); the two
    # linears are (C*H*W -> mid_units) and (mid_units -> num_labels).
    B, C, H, W = 2, 4, 16, 16          # K = 1024
    mid_units, num_labels = 128, 128

    key = jax.random.PRNGKey(0)
    kx, kp = jax.random.split(key)
    x = jax.random.normal(kx, (B, C, H, W), dtype=jnp.float32)
    w1, b1, w2, b2 = init_params(kp, C * H * W, mid_units, num_labels)

    # One-time layout prep (transpose + pad) — outside the per-call path.
    # For bf16 weight streaming: prepare_params(..., compute_dtype=jnp.bfloat16)
    # (validate tolerances before enabling; demo keeps f32 for exact checking).
    w1t, b1p, w2t, b2p = prepare_params(w1, b1, w2, b2)

    out = reglog_mid_forward(x, w1t, b1p, w2t, b2p, num_labels=num_labels)
    out = jax.block_until_ready(out)

    # Pure-JAX reference check (same semantics as the PyTorch forward).
    x_flat = x.reshape(B, C * H * W)
    ref = (x_flat @ w1.T + b1) @ w2.T + b2
    assert out.shape == (B, num_labels)
    assert jnp.allclose(out, ref, atol=1e-4, rtol=1e-4)

    print("KERNEL_OK")
</pallas_src>

<mosaic_0001>
module attributes {stable_mosaic.version = 11 : i64} {
  func.func @_reglog_mid_kernel(%arg0: i32, %arg1: i32, %arg2: memref<8x1024xf32, #tpu.memory_space<vmem>>, %arg3: memref<1024x128xf32, #tpu.memory_space<vmem>>, %arg4: memref<1x128xf32, #tpu.memory_space<vmem>>, %arg5: memref<128x128xf32, #tpu.memory_space<vmem>>, %arg6: memref<1x128xf32, #tpu.memory_space<vmem>>, %arg7: memref<8x128xf32, #tpu.memory_space<vmem>>, %arg8: memref<8x128xf32, #tpu.memory_space<vmem>>) attributes {dimension_semantics = [#tpu.dimension_semantics<parallel>, #tpu.dimension_semantics<arbitrary>], iteration_bounds = array<i64: 1, 1>, scalar_prefetch = 0 : i64, scratch_operands = 1 : i64, tpu.core_type = #tpu.core_type<tc>, window_params = [{transform_indices = @transform_0, window_bounds = array<i64: 8, 1024>}, {transform_indices = @transform_1, window_bounds = array<i64: 1024, 128>}, {pipeline_mode = #tpu.pipeline_mode<synchronous>, transform_indices = @transform_2, window_bounds = array<i64: 1, 128>}, {pipeline_mode = #tpu.pipeline_mode<synchronous>, transform_indices = @transform_3, window_bounds = array<i64: 128, 128>}, {pipeline_mode = #tpu.pipeline_mode<synchronous>, transform_indices = @transform_4, window_bounds = array<i64: 1, 128>}, {transform_indices = @transform_5, window_bounds = array<i64: 8, 128>}]} {
    %c0_i32 = arith.constant 0 : i32
    %0 = arith.cmpi eq, %arg1, %c0_i32 : i32
    %1 = arith.extui %0 : i1 to i32
    %c0_i32_0 = arith.constant 0 : i32
    %2 = arith.cmpi ne, %1, %c0_i32_0 : i32
    scf.if %2 {
      %cst_10 = arith.constant 0.000000e+00 : f32
      %12 = vector.broadcast %cst_10 : f32 to vector<8x128xf32>
      %c0_11 = arith.constant 0 : index
      %c0_12 = arith.constant 0 : index
      %13 = vector.load %arg8[%c0_11, %c0_12] : memref<8x128xf32, #tpu.memory_space<vmem>>, vector<8x128xf32>
      tpu.vector_store %arg8[%c0_11, %c0_12], %12 {strides = array<i32>} : memref<8x128xf32, #tpu.memory_space<vmem>>, vector<8x128xf32>,
    } else {
    }
    %c0 = arith.constant 0 : index
    %c0_1 = arith.constant 0 : index
    %3 = vector.load %arg8[%c0, %c0_1] : memref<8x128xf32, #tpu.memory_space<vmem>>, vector<8x128xf32>
    %c0_2 = arith.constant 0 : index
    %c0_3 = arith.constant 0 : index
    %4 = vector.load %arg2[%c0_2, %c0_3] : memref<8x1024xf32, #tpu.memory_space<vmem>>, vector<8x1024xf32>
    %c0_4 = arith.constant 0 : index
    %c0_5 = arith.constant 0 : index
    %5 = vector.load %arg3[%c0_4, %c0_5] : memref<1024x128xf32, #tpu.memory_space<vmem>>, vector<1024x128xf32>
    %cst = arith.constant dense<0.000000e+00> : vector<8x128xf32>
    %6 = tpu.matmul %4, %5, %cst {dimension_numbers = #tpu.dot_dimension_numbers<[1], [0], [0], [1], [0, 0, 1, 1], [], []>} : vector<8x1024xf32>, vector<1024x128xf32>, vector<8x128xf32> -> vector<8x128xf32>
    %7 = arith.addf %3, %6 : vector<8x128xf32>
    %c0_6 = arith.constant 0 : index
    %c0_7 = arith.constant 0 : index
    %8 = vector.load %arg8[%c0_6, %c0_7] : memref<8x128xf32, #tpu.memory_space<vmem>>, vector<8x128xf32>
    tpu.vector_store %arg8[%c0_6, %c0_7], %7 {strides = array<i32>} : memref<8x128xf32, #tpu.memory_space<vmem>>, vector<8x128xf32>,
    %c0_i32_8 = arith.constant 0 : i32
    %9 = arith.cmpi eq, %arg1, %c0_i32_8 : i32
    %10 = arith.extui %9 : i1 to i32
    %c0_i32_9 = arith.constant 0 : i32
    %11 = arith.cmpi ne, %10, %c0_i32_9 : i32
    scf.if %11 {
      %c0_10 = arith.constant 0 : index
      %c0_11 = arith.constant 0 : index
      %12 = vector.load %arg8[%c0_10, %c0_11] : memref<8x128xf32, #tpu.memory_space<vmem>>, vector<8x128xf32>
      %c0_12 = arith.constant 0 : index
      %c0_13 = arith.constant 0 : index
      %13 = vector.load %arg4[%c0_12, %c0_13] : memref<1x128xf32, #tpu.memory_space<vmem>>, vector<1x128xf32>
      %14 = vector.broadcast %13 : vector<1x128xf32> to vector<8x128xf32>
      %15 = arith.addf %12, %14 : vector<8x128xf32>
      %c0_14 = arith.constant 0 : index
      %c0_15 = arith.constant 0 : index
      %16 = vector.load %arg5[%c0_14, %c0_15] : memref<128x128xf32, #tpu.memory_space<vmem>>, vector<128x128xf32>
      %cst_16 = arith.constant dense<0.000000e+00> : vector<8x128xf32>
      %17 = tpu.matmul %15, %16, %cst_16 {dimension_numbers = #tpu.dot_dimension_numbers<[1], [0], [0], [1], [0, 0, 1, 1], [], []>} : vector<8x128xf32>, vector<128x128xf32>, vector<8x128xf32> -> vector<8x128xf32>
      %c0_17 = arith.constant 0 : index
      %c0_18 = arith.constant 0 : index
      %18 = vector.load %arg6[%c0_17, %c0_18] : memref<1x128xf32, #tpu.memory_space<vmem>>, vector<1x128xf32>
      %19 = vector.broadcast %18 : vector<1x128xf32> to vector<8x128xf32>
      %20 = arith.addf %17, %19 : vector<8x128xf32>
      %c0_19 = arith.constant 0 : index
      %c0_20 = arith.constant 0 : index
      %21 = vector.load %arg7[%c0_19, %c0_20] : memref<8x128xf32, #tpu.memory_space<vmem>>, vector<8x128xf32>
      tpu.vector_store %arg7[%c0_19, %c0_20], %20 {strides = array<i32>} : memref<8x128xf32, #tpu.memory_space<vmem>>, vector<8x128xf32>,
    } else {
    }
    return
  }
  func.func @transform_0(%arg0: i32, %arg1: i32) -> (i32, i32) {
    %c0_i32 = arith.constant 0 : i32
    return %arg0, %arg1 : i32, i32
  }
  func.func @transform_1(%arg0: i32, %arg1: i32) -> (i32, i32) {
    %c0_i32 = arith.constant 0 : i32
    %c0_i32_0 = arith.constant 0 : i32
    return %arg1, %c0_i32 : i32, i32
  }
  func.func @transform_2(%arg0: i32, %arg1: i32) -> (i32, i32) {
    %c0_i32 = arith.constant 0 : i32
    %c0_i32_0 = arith.constant 0 : i32
    %c0_i32_1 = arith.constant 0 : i32
    return %c0_i32, %c0_i32_0 : i32, i32
  }
  func.func @transform_3(%arg0: i32, %arg1: i32) -> (i32, i32) {
    %c0_i32 = arith.constant 0 : i32
    %c0_i32_0 = arith.constant 0 : i32
    %c0_i32_1 = arith.constant 0 : i32
    return %c0_i32, %c0_i32_0 : i32, i32
  }
  func.func @transform_4(%arg0: i32, %arg1: i32) -> (i32, i32) {
    %c0_i32 = arith.constant 0 : i32
    %c0_i32_0 = arith.constant 0 : i32
    %c0_i32_1 = arith.constant 0 : i32
    return %c0_i32, %c0_i32_0 : i32, i32
  }
  func.func @transform_5(%arg0: i32, %arg1: i32) -> (i32, i32) {
    %c0_i32 = arith.constant 0 : i32
    %c0_i32_0 = arith.constant 0 : i32
    return %arg0, %c0_i32 : i32, i32
  }
}

</mosaic_0001>

<bundles_post_ra>
// kernel: reglog_mid_forward.1
= control target key start
LH: loop header
LB: loop body
LE: loop exit
PB: predicated region body
PF: predicated region fallthrough
CT: control target
= control target key end

     0   :  { %10 = vsyncpa [#allocation4], 0  ;;  %s790_s18 = smov [#allocation3]   ;;  %s909_s0 = inlined_call_operand.vmem [shape: f32[8,1024], index: 0, kind: input, shape index: {}]   ;;  %s910_s1 = inlined_call_operand.hbm [shape: f32[1024,128], index: 1, kind: input, shape index: {}]   ;;  %s911_s2 = inlined_call_operand.vmem [shape: f32[1,128], index: 2, kind: input, shape index: {}]   ;;  %s912_s3 = inlined_call_operand.vmem [shape: f32[128,128], index: 3, kind: input, shape index: {}]   ;;  %s913_s4 = inlined_call_operand.vmem [shape: f32[1,128], index: 4, kind: input, shape index: {}]   ;;  %s914_s5 = inlined_call_operand.vmem [shape: f32[8,128], index: 5, kind: output, shape index: {}]  }
   0x1   :  { %s18_s19 = sshll.u32 %s790_s18, 4  ;;  %s19_s19 = int_to_ptr.vmem [resolvable:$true] %s18_s19 }
   0x2   :  { %s776_s20 = scalar_lea.vmem %s19_s19, 16384  ;;  %p781_p1 = scmp.lt.s32.totalorder %s19_s19, %s19_s19 }
   0x3   :  { %p777_p0 = scmp.ne.s32.totalorder %s19_s19, %s776_s20  ;;  %p782_p2 = scmp.lt.s32.totalorder %s776_s20, %s776_s20 }
   0x5   :  { %p783_p3 = por %p782_p2, %p781_p1 }
   0x7   :  { %p784_p4 = pnand %p783_p3, %p777_p0 }
   0x9   :  { %787 = shalt.err (!%p784_p4)
}
   0xa   :  { %s791_s21 = smov 128   ;;  %s792_s22 = smov 8  }
   0xb   :  { %24 = dma.hbm_to_vmem [thread:$0]  %s910_s1, 16384, %s19_s19, [#allocation4], %s791_s21, %s791_s21, %s792_s22  }
   0xc   :  { %788 = dma.done.wait [#allocation4], 16384  }
   0xd   :  { %789 = vsyncadd [#allocation4], 4294950912  ;;  %v79_v0 = vld [vmem:[#allocation3 + $0xf8] sm:$0xff]  ;;  %v78_v4 = vld [vmem:[#allocation3 + $0xf0] sm:$0xff]  ;;  %vm794_vm0 = vmmov 0  }
   0xe   :  { %v111_v1 = vld [vmem:[#allocation3 + $0x1f8] sm:$0xff]  ;;  %571 = vmatprep.subr.mxu0 %v79_v0  ;;  %v110_v5 = vld [vmem:[#allocation3 + $0x1f0] sm:$0xff]  ;;  %v77_v8 = vld [vmem:[#allocation3 + $0xe8] sm:$0xff] }
   0xf   :  { %v63_v2 = vld [vmem:[#allocation3 + $0x78] sm:$0xff]  ;;  %606 = vmatprep.subr.mxu1 %v111_v1  ;;  %v62_v6 = vld [vmem:[#allocation3 + $0x70] sm:$0xff]  ;;  %v109_v9 = vld [vmem:[#allocation3 + $0x1e8] sm:$0xff] }
  0x10   :  { %v95_v3 = vld [vmem:[#allocation3 + $0x178] sm:$0xff]  ;;  %572 = vmatpush3.msra.mxu0 %v63_v2  ;;  %v94_v7 = vld [vmem:[#allocation3 + $0x170] sm:$0xff]  ;;  %v61_v10 = vld [vmem:[#allocation3 + $0x68] sm:$0xff] }
  0x11   :  { %607 = vmatpush3.msra.mxu1 %v95_v3  ;;  %573 = vmatprep.subr.mxu0 %v78_v4  ;;  %v93_v11 = vld [vmem:[#allocation3 + $0x168] sm:$0xff]  ;;  %v76_v12 = vld [vmem:[#allocation3 + $0xe0] sm:$0xff]  ;;  %v75_v16 = vld [vmem:[#allocation3 + $0xd8] sm:$0xff] }
  0x12   :  { %608 = vmatprep.subr.mxu1 %v110_v5  ;;  %574 = vmatpush3.msra.mxu0 %v62_v6  ;;  %v108_v13 = vld [vmem:[#allocation3 + $0x1e0] sm:$0xff]  ;;  %v107_v17 = vld [vmem:[#allocation3 + $0x1d8] sm:$0xff]  ;;  %v74_v20 = vld [vmem:[#allocation3 + $0xd0] sm:$0xff] }
  0x13   :  { %609 = vmatpush3.msra.mxu1 %v94_v7  ;;  %575 = vmatprep.subr.mxu0 %v77_v8  ;;  %v60_v14 = vld [vmem:[#allocation3 + $0x60] sm:$0xff]  ;;  %v59_v18 = vld [vmem:[#allocation3 + $0x58] sm:$0xff]  ;;  %v106_v21 = vld [vmem:[#allocation3 + $0x1d0] sm:$0xff] }
  0x14   :  { %610 = vmatprep.subr.mxu1 %v109_v9  ;;  %v92_v15 = vld [vmem:[#allocation3 + $0x160] sm:$0xff]  ;;  %576 = vmatpush3.msra.mxu0 %v61_v10  ;;  %v91_v19 = vld [vmem:[#allocation3 + $0x158] sm:$0xff]  ;;  %v58_v22 = vld [vmem:[#allocation3 + $0x50] sm:$0xff] }
  0x15   :  { %611 = vmatpush3.msra.mxu1 %v93_v11  ;;  %577 = vmatprep.subr.mxu0 %v76_v12  ;;  %v90_v23 = vld [vmem:[#allocation3 + $0x150] sm:$0xff]  ;;  %v73_v24 = vld [vmem:[#allocation3 + $0xc8] sm:$0xff]  ;;  %v72_v28 = vld [vmem:[#allocation3 + $0xc0] sm:$0xff] }
  0x16   :  { %612 = vmatprep.subr.mxu1 %v108_v13  ;;  %578 = vmatpush3.msra.mxu0 %v60_v14  ;;  %v105_v25 = vld [vmem:[#allocation3 + $0x1c8] sm:$0xff]  ;;  %v104_v29 = vld [vmem:[#allocation3 + $0x1c0] sm:$0xff]  ;;  %v71_v32 = vld [vmem:[#allocation3 + $0xb8] sm:$0xff] }
  0x17   :  { %613 = vmatpush3.msra.mxu1 %v92_v15  ;;  %579 = vmatprep.subr.mxu0 %v75_v16  ;;  %v57_v26 = vld [vmem:[#allocation3 + $0x48] sm:$0xff]  ;;  %v56_v30 = vld [vmem:[#allocation3 + $0x40] sm:$0xff]  ;;  %v103_v33 = vld [vmem:[#allocation3 + $0x1b8] sm:$0xff] }
  0x18   :  { %614 = vmatprep.subr.mxu1 %v107_v17  ;;  %580 = vmatpush3.msra.mxu0 %v59_v18  ;;  %v89_v27 = vld [vmem:[#allocation3 + $0x148] sm:$0xff]  ;;  %v88_v31 = vld [vmem:[#allocation3 + $0x140] sm:$0xff]  ;;  %v55_v34 = vld [vmem:[#allocation3 + $0x38] sm:$0xff] }
  0x19   :  { %615 = vmatpush3.msra.mxu1 %v91_v19  ;;  %581 = vmatprep.subr.mxu0 %v74_v20  ;;  %v87_v35 = vld [vmem:[#allocation3 + $0x138] sm:$0xff]  ;;  %v70_v36 = vld [vmem:[#allocation3 + $0xb0] sm:$0xff]  ;;  %v69_v40 = vld [vmem:[#allocation3 + $0xa8] sm:$0xff] }
  0x1a   :  { %616 = vmatprep.subr.mxu1 %v106_v21  ;;  %582 = vmatpush3.msra.mxu0 %v58_v22  ;;  %v102_v37 = vld [vmem:[#allocation3 + $0x1b0] sm:$0xff]  ;;  %v101_v41 = vld [vmem:[#allocation3 + $0x1a8] sm:$0xff]  ;;  %v68_v44 = vld [vmem:[#allocation3 + $0xa0] sm:$0xff] }
  0x1b   :  { %617 = vmatpush3.msra.mxu1 %v90_v23  ;;  %583 = vmatprep.subr.mxu0 %v73_v24  ;;  %v54_v38 = vld [vmem:[#allocation3 + $0x30] sm:$0xff]  ;;  %v53_v42 = vld [vmem:[#allocation3 + $0x28] sm:$0xff]  ;;  %v100_v45 = vld [vmem:[#allocation3 + $0x1a0] sm:$0xff] }
  0x1c   :  { %618 = vmatprep.subr.mxu1 %v105_v25  ;;  %584 = vmatpush3.msra.mxu0 %v57_v26  ;;  %v86_v39 = vld [vmem:[#allocation3 + $0x130] sm:$0xff]  ;;  %v85_v43 = vld [vmem:[#allocation3 + $0x128] sm:$0xff]  ;;  %v52_v46 = vld [vmem:[#allocation3 + $0x20] sm:$0xff] }
  0x1d   :  { %619 = vmatpush3.msra.mxu1 %v89_v27  ;;  %585 = vmatprep.subr.mxu0 %v72_v28  ;;  %v84_v47 = vld [vmem:[#allocation3 + $0x120] sm:$0xff]  ;;  %v67_v48 = vld [vmem:[#allocation3 + $0x98] sm:$0xff]  ;;  %v66_v52 = vld [vmem:[#allocation3 + $0x90] sm:$0xff] }
  0x1e   :  { %620 = vmatprep.subr.mxu1 %v104_v29  ;;  %586 = vmatpush3.msra.mxu0 %v56_v30  ;;  %v99_v49 = vld [vmem:[#allocation3 + $0x198] sm:$0xff]  ;;  %v98_v53 = vld [vmem:[#allocation3 + $0x190] sm:$0xff]  ;;  %v65_v56 = vld [vmem:[#allocation3 + $0x88] sm:$0xff] }
  0x1f   :  { %621 = vmatpush3.msra.mxu1 %v88_v31  ;;  %587 = vmatprep.subr.mxu0 %v71_v32  ;;  %v51_v50 = vld [vmem:[#allocation3 + $0x18] sm:$0xff]  ;;  %v50_v54 = vld [vmem:[#allocation3 + $0x10] sm:$0xff]  ;;  %v97_v57 = vld [vmem:[#allocation3 + $0x188] sm:$0xff] }
  0x20   :  { %622 = vmatprep.subr.mxu1 %v103_v33  ;;  %588 = vmatpush3.msra.mxu0 %v55_v34  ;;  %v83_v51 = vld [vmem:[#allocation3 + $0x118] sm:$0xff]  ;;  %v82_v55 = vld [vmem:[#allocation3 + $0x110] sm:$0xff]  ;;  %v49_v58 = vld [vmem:[#allocation3 + $0x8] sm:$0xff] }
  0x21   :  { %623 = vmatpush3.msra.mxu1 %v87_v35  ;;  %589 = vmatprep.subr.mxu0 %v70_v36  ;;  %v81_v59 = vld [vmem:[#allocation3 + $0x108] sm:$0xff]  ;;  %v64_v60 = vld [vmem:[#allocation3 + $0x80] sm:$0xff]  ;;  %v43_v1 = vld [vmem:[%s909_s0 + $0x18] sm:$0xff] }
  0x22   :  { %624 = vmatprep.subr.mxu1 %v102_v37  ;;  %590 = vmatpush3.msra.mxu0 %v54_v38  ;;  %v96_v61 = vld [vmem:[#allocation3 + $0x180] sm:$0xff]  ;;  %v41_v63 = vld [vmem:[%s909_s0 + $0x8] sm:$0xff]  ;;  %v42_v3 = vld [vmem:[%s909_s0 + $0x10] sm:$0xff] }
  0x23   :  { %625 = vmatpush3.msra.mxu1 %v86_v39  ;;  %591 = vmatprep.subr.mxu0 %v69_v40  ;;  %v48_v62 = vld [vmem:[#allocation3] sm:$0xff]  ;;  %v143_v4 = vld [vmem:[#allocation3 + $0x2f8] sm:$0xff]  ;;  %v142_v8 = vld [vmem:[#allocation3 + $0x2f0] sm:$0xff] }
  0x24   :  { %626 = vmatprep.subr.mxu1 %v101_v41  ;;  %592 = vmatpush3.msra.mxu0 %v53_v42  ;;  %v80_v0 = vld [vmem:[#allocation3 + $0x100] sm:$0xff]  ;;  %v175_v5 = vld [vmem:[#allocation3 + $0x3f8] sm:$0xff]  ;;  %v174_v9 = vld [vmem:[#allocation3 + $0x3f0] sm:$0xff] }
  0x25   :  { %627 = vmatpush3.msra.mxu1 %v85_v43  ;;  %593 = vmatprep.subr.mxu0 %v68_v44  ;;  %v40_v2 = vld [vmem:[%s909_s0] sm:$0xff]  ;;  %v127_v6 = vld [vmem:[#allocation3 + $0x278] sm:$0xff]  ;;  %v126_v10 = vld [vmem:[#allocation3 + $0x270] sm:$0xff] }
  0x26   :  { %628 = vmatprep.subr.mxu1 %v100_v45  ;;  %594 = vmatpush3.msra.mxu0 %v52_v46  ;;  %v159_v7 = vld [vmem:[#allocation3 + $0x378] sm:$0xff]  ;;  %v158_v11 = vld [vmem:[#allocation3 + $0x370] sm:$0xff]  ;;  %v141_v12 = vld [vmem:[#allocation3 + $0x2e8] sm:$0xff] }
  0x27   :  { %629 = vmatpush3.msra.mxu1 %v84_v47  ;;  %595 = vmatprep.subr.mxu0 %v67_v48  ;;  %v173_v13 = vld [vmem:[#allocation3 + $0x3e8] sm:$0xff]  ;;  %v140_v16 = vld [vmem:[#allocation3 + $0x2e0] sm:$0xff]  ;;  %v139_v20 = vld [vmem:[#allocation3 + $0x2d8] sm:$0xff] }
  0x28   :  { %630 = vmatprep.subr.mxu1 %v99_v49  ;;  %596 = vmatpush3.msra.mxu0 %v51_v50  ;;  %v125_v14 = vld [vmem:[#allocation3 + $0x268] sm:$0xff]  ;;  %v172_v17 = vld [vmem:[#allocation3 + $0x3e0] sm:$0xff]  ;;  %v171_v21 = vld [vmem:[#allocation3 + $0x3d8] sm:$0xff] }
  0x29   :  { %631 = vmatpush3.msra.mxu1 %v83_v51  ;;  %597 = vmatprep.subr.mxu0 %v66_v52  ;;  %v157_v15 = vld [vmem:[#allocation3 + $0x368] sm:$0xff]  ;;  %v124_v18 = vld [vmem:[#allocation3 + $0x260] sm:$0xff]  ;;  %v123_v22 = vld [vmem:[#allocation3 + $0x258] sm:$0xff] }
  0x2a   :  { %632 = vmatprep.subr.mxu1 %v98_v53  ;;  %598 = vmatpush3.msra.mxu0 %v50_v54  ;;  %v156_v19 = vld [vmem:[#allocation3 + $0x360] sm:$0xff]  ;;  %v155_v23 = vld [vmem:[#allocation3 + $0x358] sm:$0xff]  ;;  %v138_v24 = vld [vmem:[#allocation3 + $0x2d0] sm:$0xff] }
  0x2b   :  { %633 = vmatpush3.msra.mxu1 %v82_v55  ;;  %599 = vmatprep.subr.mxu0 %v65_v56  ;;  %v170_v25 = vld [vmem:[#allocation3 + $0x3d0] sm:$0xff]  ;;  %v137_v28 = vld [vmem:[#allocation3 + $0x2c8] sm:$0xff]  ;;  %v136_v32 = vld [vmem:[#allocation3 + $0x2c0] sm:$0xff] }
  0x2c   :  { %634 = vmatprep.subr.mxu1 %v97_v57  ;;  %600 = vmatpush3.msra.mxu0 %v49_v58  ;;  %v122_v26 = vld [vmem:[#allocation3 + $0x250] sm:$0xff]  ;;  %v169_v29 = vld [vmem:[#allocation3 + $0x3c8] sm:$0xff]  ;;  %v168_v33 = vld [vmem:[#allocation3 + $0x3c0] sm:$0xff] }
  0x2d   :  { %635 = vmatpush3.msra.mxu1 %v81_v59  ;;  %601 = vmatprep.subr.mxu0 %v64_v60  ;;  %v154_v27 = vld [vmem:[#allocation3 + $0x350] sm:$0xff]  ;;  %v121_v30 = vld [vmem:[#allocation3 + $0x248] sm:$0xff]  ;;  %v120_v34 = vld [vmem:[#allocation3 + $0x240] sm:$0xff] }
  0x2e   :  { %636 = vmatprep.subr.mxu1 %v96_v61  ;;  %602 = vmatpush3.msra.mxu0 %v48_v62  ;;  %v153_v31 = vld [vmem:[#allocation3 + $0x348] sm:$0xff]  ;;  %v152_v35 = vld [vmem:[#allocation3 + $0x340] sm:$0xff]  ;;  %v135_v36 = vld [vmem:[#allocation3 + $0x2b8] sm:$0xff] }
  0x2f   :  { %240 = vmatprep.mubr.f32.mxu0 %v41_v63  ;;  %637 = vmatpush3.msra.mxu1 %v80_v0  ;;  %v167_v37 = vld [vmem:[#allocation3 + $0x3b8] sm:$0xff]  ;;  %v134_v40 = vld [vmem:[#allocation3 + $0x2b0] sm:$0xff]  ;;  %v133_v44 = vld [vmem:[#allocation3 + $0x2a8] sm:$0xff] }
  0x30   :  { %310 = vmatprep.mubr.f32.mxu1 %v43_v1  ;;  %241 = vmatmul.mubr.f32.vlgmr.msra.gmra.mxu0 %v40_v2  ;;  %v119_v38 = vld [vmem:[#allocation3 + $0x238] sm:$0xff]  ;;  %v166_v41 = vld [vmem:[#allocation3 + $0x3b0] sm:$0xff]  ;;  %v165_v45 = vld [vmem:[#allocation3 + $0x3a8] sm:$0xff] }
  0x31   :  { %311 = vmatmul.mubr.f32.vlgmr.msra.gmra.mxu1 %v42_v3  ;;  %641 = vmatprep.subr.mxu0 %v143_v4  ;;  %v151_v39 = vld [vmem:[#allocation3 + $0x338] sm:$0xff]  ;;  %v118_v42 = vld [vmem:[#allocation3 + $0x230] sm:$0xff]  ;;  %v117_v46 = vld [vmem:[#allocation3 + $0x228] sm:$0xff] }
  0x32   :  { %676 = vmatprep.subr.mxu1 %v175_v5  ;;  %642 = vmatpush3.msra.mxu0 %v127_v6  ;;  %v150_v43 = vld [vmem:[#allocation3 + $0x330] sm:$0xff]  ;;  %v149_v47 = vld [vmem:[#allocation3 + $0x328] sm:$0xff]  ;;  %v132_v48 = vld [vmem:[#allocation3 + $0x2a0] sm:$0xff] }
  0x33   :  { %677 = vmatpush3.msra.mxu1 %v159_v7  ;;  %643 = vmatprep.subr.mxu0 %v142_v8  ;;  %v164_v49 = vld [vmem:[#allocation3 + $0x3a0] sm:$0xff]  ;;  %v131_v52 = vld [vmem:[#allocation3 + $0x298] sm:$0xff]  ;;  %v130_v56 = vld [vmem:[#allocation3 + $0x290] sm:$0xff] }
  0x34   :  { %678 = vmatprep.subr.mxu1 %v174_v9  ;;  %644 = vmatpush3.msra.mxu0 %v126_v10  ;;  %v116_v50 = vld [vmem:[#allocation3 + $0x220] sm:$0xff]  ;;  %v163_v53 = vld [vmem:[#allocation3 + $0x398] sm:$0xff]  ;;  %v162_v57 = vld [vmem:[#allocation3 + $0x390] sm:$0xff]  ;;  %v793_v9 = vmov 0.0  }
  0x35   :  { %679 = vmatpush3.msra.mxu1 %v158_v11  ;;  %645 = vmatprep.subr.mxu0 %v141_v12  ;;  %v148_v51 = vld [vmem:[#allocation3 + $0x320] sm:$0xff]  ;;  %v115_v54 = vld [vmem:[#allocation3 + $0x218] sm:$0xff]  ;;  %v114_v58 = vld [vmem:[#allocation3 + $0x210] sm:$0xff] }
  0x36   :  { %680 = vmatprep.subr.mxu1 %v173_v13  ;;  %646 = vmatpush3.msra.mxu0 %v125_v14  ;;  %v147_v55 = vld [vmem:[#allocation3 + $0x318] sm:$0xff]  ;;  %v146_v59 = vld [vmem:[#allocation3 + $0x310] sm:$0xff]  ;;  %v129_v60 = vld [vmem:[#allocation3 + $0x288] sm:$0xff] }
  0x37   :  { %681 = vmatpush3.msra.mxu1 %v157_v15  ;;  %647 = vmatprep.subr.mxu0 %v140_v16  ;;  %v161_v61 = vld [vmem:[#allocation3 + $0x388] sm:$0xff]  ;;  %v128_v0 = vld [vmem:[#allocation3 + $0x280] sm:$0xff]  ;;  %v47_v5 = vld [vmem:[%s909_s0 + $0x38] sm:$0xff] }
  0x38   :  { %682 = vmatprep.subr.mxu1 %v172_v17  ;;  %648 = vmatpush3.msra.mxu0 %v124_v18  ;;  %v113_v62 = vld [vmem:[#allocation3 + $0x208] sm:$0xff]  ;;  %v160_v1 = vld [vmem:[#allocation3 + $0x380] sm:$0xff]  ;;  %v46_v7 = vld [vmem:[%s909_s0 + $0x30] sm:$0xff] }
  0x39   :  { %683 = vmatpush3.msra.mxu1 %v156_v19  ;;  %649 = vmatprep.subr.mxu0 %v139_v20  ;;  %v145_v63 = vld [vmem:[#allocation3 + $0x308] sm:$0xff]  ;;  %v112_v2 = vld [vmem:[#allocation3 + $0x200] sm:$0xff]  ;;  %v485_v8 = vld [vmem:[%s912_s3 + $0x78] sm:$0xff] }
  0x3a   :  { %684 = vmatprep.subr.mxu1 %v171_v21  ;;  %650 = vmatpush3.msra.mxu0 %v123_v22  ;;  %v45_v3 = vld [vmem:[%s909_s0 + $0x28] sm:$0xff]  ;;  %v144_v4 = vld [vmem:[#allocation3 + $0x300] sm:$0xff]  ;;  %v484_v10 = vld [vmem:[%s912_s3 + $0x70] sm:$0xff] }
  0x3b   :  { %685 = vmatpush3.msra.mxu1 %v155_v23  ;;  %651 = vmatprep.subr.mxu0 %v138_v24  ;;  %v44_v6 = vld [vmem:[%s909_s0 + $0x20] sm:$0xff]  ;;  %v483_v11 = vld [vmem:[%s912_s3 + $0x68] sm:$0xff]  ;;  %v481_v13 = vld [vmem:[%s912_s3 + $0x58] sm:$0xff] }
  0x3c   :  { %686 = vmatprep.subr.mxu1 %v170_v25  ;;  %652 = vmatpush3.msra.mxu0 %v122_v26  ;;  %v482_v12 = vld [vmem:[%s912_s3 + $0x60] sm:$0xff]  ;;  %v480_v14 = vld [vmem:[%s912_s3 + $0x50] sm:$0xff]  ;;  %v479_v15 = vld [vmem:[%s912_s3 + $0x48] sm:$0xff] }
  0x3d   :  { %687 = vmatpush3.msra.mxu1 %v154_v27  ;;  %653 = vmatprep.subr.mxu0 %v137_v28  ;;  %v478_v16 = vld [vmem:[%s912_s3 + $0x40] sm:$0xff]  ;;  %v477_v17 = vld [vmem:[%s912_s3 + $0x38] sm:$0xff]  ;;  %v476_v18 = vld [vmem:[%s912_s3 + $0x30] sm:$0xff] }
  0x3e   :  { %688 = vmatprep.subr.mxu1 %v169_v29  ;;  %654 = vmatpush3.msra.mxu0 %v121_v30  ;;  %v475_v19 = vld [vmem:[%s912_s3 + $0x28] sm:$0xff]  ;;  %v474_v20 = vld [vmem:[%s912_s3 + $0x20] sm:$0xff]  ;;  %v473_v21 = vld [vmem:[%s912_s3 + $0x18] sm:$0xff] }
  0x3f   :  { %689 = vmatpush3.msra.mxu1 %v153_v31  ;;  %655 = vmatprep.subr.mxu0 %v136_v32  ;;  %v472_v22 = vld [vmem:[%s912_s3 + $0x10] sm:$0xff]  ;;  %v471_v23 = vld [vmem:[%s912_s3 + $0x8] sm:$0xff]  ;;  %v470_v24 = vld [vmem:[%s912_s3] sm:$0xff] }
  0x40   :  { %690 = vmatprep.subr.mxu1 %v168_v33  ;;  %656 = vmatpush3.msra.mxu0 %v120_v34 }
  0x41   :  { %691 = vmatpush3.msra.mxu1 %v152_v35  ;;  %657 = vmatprep.subr.mxu0 %v135_v36 }
  0x42   :  { %692 = vmatprep.subr.mxu1 %v167_v37  ;;  %658 = vmatpush3.msra.mxu0 %v119_v38 }
  0x43   :  { %693 = vmatpush3.msra.mxu1 %v151_v39  ;;  %659 = vmatprep.subr.mxu0 %v134_v40  ;;  %v569_v39 = vld [vmem:[%s911_s2] ss:$0 sm:$0xff] }
  0x44   :  { %694 = vmatprep.subr.mxu1 %v166_v41  ;;  %660 = vmatpush3.msra.mxu0 %v118_v42  ;;  %v570_v42 = vld [vmem:[%s913_s4] ss:$0 sm:$0xff] }
  0x45   :  { %695 = vmatpush3.msra.mxu1 %v150_v43  ;;  %661 = vmatprep.subr.mxu0 %v133_v44 }
  0x46   :  { %696 = vmatprep.subr.mxu1 %v165_v45  ;;  %662 = vmatpush3.msra.mxu0 %v117_v46 }
  0x47   :  { %697 = vmatpush3.msra.mxu1 %v149_v47  ;;  %663 = vmatprep.subr.mxu0 %v132_v48 }
  0x48   :  { %698 = vmatprep.subr.mxu1 %v164_v49  ;;  %664 = vmatpush3.msra.mxu0 %v116_v50 }
  0x49   :  { %699 = vmatpush3.msra.mxu1 %v148_v51  ;;  %665 = vmatprep.subr.mxu0 %v131_v52 }
  0x4a   :  { %700 = vmatprep.subr.mxu1 %v163_v53  ;;  %666 = vmatpush3.msra.mxu0 %v115_v54 }
  0x4b   :  { %701 = vmatpush3.msra.mxu1 %v147_v55  ;;  %667 = vmatprep.subr.mxu0 %v130_v56 }
  0x4c   :  { %702 = vmatprep.subr.mxu1 %v162_v57  ;;  %668 = vmatpush3.msra.mxu0 %v114_v58 }
  0x4d   :  { %703 = vmatpush3.msra.mxu1 %v146_v59  ;;  %669 = vmatprep.subr.mxu0 %v129_v60 }
  0x4e   :  { %704 = vmatprep.subr.mxu1 %v161_v61  ;;  %670 = vmatpush3.msra.mxu0 %v113_v62 }
  0x4f   :  { %705 = vmatpush3.msra.mxu1 %v145_v63  ;;  %671 = vmatprep.subr.mxu0 %v128_v0 }
  0x50   :  { %706 = vmatprep.subr.mxu1 %v160_v1  ;;  %672 = vmatpush3.msra.mxu0 %v112_v2 }
  0x51   :  { %380 = vmatprep.mubr.f32.mxu0 %v45_v3  ;;  %707 = vmatpush3.msra.mxu1 %v144_v4 }
  0x52   :  { %450 = vmatprep.mubr.f32.mxu1 %v47_v5  ;;  %381 = vmatmul.mubr.f32.vlgmr.msra.gmra.mxu0 %v44_v6 }
  0x53   :  { %451 = vmatmul.mubr.f32.vlgmr.msra.gmra.mxu1 %v46_v7  ;;  %728 = vmatprep.subr.mxu0 %v793_v9 }
  0x54   :  { %729 = vmatpush3.msra.mxu0 %v485_v8  ;;  %760 = vmatprep.mubr.msk.f32.mxu0 %vm794_vm0, %v793_v9 }
  0x55   :  { %730 = vmatprep.subr.mxu0 %v793_v9 }
  0x56   :  { %731 = vmatpush3.msra.mxu0 %v484_v10 }
  0x57   :  { %732 = vmatprep.subr.mxu0 %v793_v9 }
  0x58   :  { %733 = vmatpush3.msra.mxu0 %v483_v11 }
  0x59   :  { %734 = vmatprep.subr.mxu0 %v793_v9 }
  0x5a   :  { %735 = vmatpush3.msra.mxu0 %v482_v12 }
  0x5b   :  { %736 = vmatprep.subr.mxu0 %v793_v9 }
  0x5c   :  { %737 = vmatpush3.msra.mxu0 %v481_v13 }
  0x5d   :  { %738 = vmatprep.subr.mxu0 %v793_v9 }
  0x5e   :  { %739 = vmatpush3.msra.mxu0 %v480_v14 }
  0x5f   :  { %740 = vmatprep.subr.mxu0 %v793_v9 }
  0x60   :  { %741 = vmatpush3.msra.mxu0 %v479_v15 }
  0x61   :  { %742 = vmatprep.subr.mxu0 %v793_v9 }
  0x62   :  { %743 = vmatpush3.msra.mxu0 %v478_v16 }
  0x63   :  { %744 = vmatprep.subr.mxu0 %v793_v9 }
  0x64   :  { %745 = vmatpush3.msra.mxu0 %v477_v17 }
  0x65   :  { %746 = vmatprep.subr.mxu0 %v793_v9 }
  0x66   :  { %747 = vmatpush3.msra.mxu0 %v476_v18 }
  0x67   :  { %748 = vmatprep.subr.mxu0 %v793_v9 }
  0x68   :  { %749 = vmatpush3.msra.mxu0 %v475_v19 }
  0x69   :  { %750 = vmatprep.subr.mxu0 %v793_v9 }
  0x6a   :  { %751 = vmatpush3.msra.mxu0 %v474_v20 }
  0x6b   :  { %752 = vmatprep.subr.mxu0 %v793_v9 }
  0x6c   :  { %753 = vmatpush3.msra.mxu0 %v473_v21 }
  0x6d   :  { %754 = vmatprep.subr.mxu0 %v793_v9 }
  0x6e   :  { %755 = vmatpush3.msra.mxu0 %v472_v22 }
  0x6f   :  { %756 = vmatprep.subr.mxu0 %v793_v9 }
  0x70   :  { %757 = vmatpush3.msra.mxu0 %v471_v23 }
  0x71   :  { %758 = vmatprep.subr.mxu0 %v793_v9 }
  0x72   :  { %759 = vmatpush3.msra.mxu0 %v470_v24 }
  0xf0   :  { %v603_v25 = vpop.f32.mrf.mxu0 }
  0xf1   :  { %v638_v26 = vpop.f32.mrf.mxu1 }
  0xf2   :  { %v604_v27 = vpop.f32.mrf.mxu0 }
  0xf3   :  { %v639_v28 = vpop.f32.mrf.mxu1  ;;  %v605_v29 = vadd.f32 %v604_v27, %v603_v25 }
  0xf4   :  { %v640_v30 = vadd.f32 %v639_v28, %v638_v26 }
  0xf6   :  { %v313_v35 = vadd.f32 %v640_v30, %v605_v29 }
 0x112   :  { %v673_v31 = vpop.f32.mrf.mxu0 }
 0x113   :  { %v708_v32 = vpop.f32.mrf.mxu1 }
 0x114   :  { %v674_v33 = vpop.f32.mrf.mxu0 }
 0x115   :  { %v709_v34 = vpop.f32.mrf.mxu1  ;;  %v675_v36 = vadd.f32 %v674_v33, %v673_v31 }
 0x116   :  { %v710_v38 = vadd.f32 %v709_v34, %v708_v32 }
 0x117   :  { %v383_v37 = vadd.f32 %v675_v36, %v313_v35 }
 0x119   :  { %v453_v40 = vadd.f32 %v710_v38, %v383_v37 }
 0x11b   :  { %v469_v41 = vadd.f32 %v569_v39, %v453_v40 }
 0x11d   :  { %761 = vmatmul.mubr.f32.vlgmr.msra.gmra.mxu0 %v469_v41 }
 0x1dd   :  { %v559_v43 = vpop.f32.mrf.mxu0 }
 0x1de   :  { %v560_v44 = vadd.f32 %v570_v42, %v559_v43 }
 0x1df   :  { %v762_v45 = vpop.f32.mrf.mxu0 }
 0x1e0   :  { %563 = vst [vmem:[%s914_s5] sm:$0xff] %v560_v44 }
 0x1e1   :  { %568 = vsyncpa [#allocation4], 1 }

</bundles_post_ra>
